<compile_context>
chip_gen: v6e
topology: v6e:2x2x1
jax: 0.10.0
libtpu: 0.0.40
codegen_flags: <defaults>
</compile_context>

<pallas_src>
import jax
import jax.numpy as jnp
from jax.experimental import pallas as pl
from jax.experimental.pallas import tpu as pltpu


def _make_lora_kernel(mxu_dtype):
    def kernel(x_ref, a_ref, b_ref, o_ref, xa_ref):
        # Correctness: the xa scratch written at j == 0 is reused by every
        # later column tile of the same row tile, so grid axis 1 (j) MUST stay
        # innermost and sequential ("arbitrary"); only axis 0 (i) is parallel.
        @pl.when(pl.program_id(1) == 0)
        def _():
            x = x_ref[...]
            a = a_ref[...]
            if mxu_dtype is not None:
                # In-kernel cast: zero extra HBM traffic, fewer MXU passes.
                x = x.astype(mxu_dtype)
                a = a.astype(mxu_dtype)
            xa_ref[...] = jnp.dot(
                x, a, preferred_element_type=jnp.float32
            ).astype(xa_ref.dtype)

        b = b_ref[...]
        if mxu_dtype is not None:
            b = b.astype(mxu_dtype)
        o_ref[...] = jnp.dot(
            xa_ref[...], b, preferred_element_type=jnp.float32
        ).astype(o_ref.dtype)

    return kernel


def _round_up(n, m):
    return ((n + m - 1) // m) * m


def _tile_vmem_bytes(rows, cols, dtype):
    """Bytes one VMEM buffer of a (rows, cols) tile really occupies,
    including (sublane, lane) physical-layout padding."""
    item = jnp.dtype(dtype).itemsize
    sublane = 8 * max(1, 4 // item)   # f32 -> 8, bf16 -> 16, int8 -> 32
    return _round_up(rows, sublane) * _round_up(cols, 128) * item


def _vmem_budget():
    """(tile working-set budget, vmem_limit_bytes) derived from this
    generation's physical VMEM (v5e/v6e: 128 MiB, v7x: 64 MiB per TC)."""
    try:
        phys = pltpu.get_tpu_info().vmem_capacity_bytes
    except Exception:
        phys = 64 * 1024 * 1024       # conservative fallback (v7x per-TC size)
    limit = (phys * 3) // 4           # requested scoped-VMEM limit
    budget = (limit * 5) // 6         # headroom for compiler-internal scratch
    return budget, limit


def _working_set_bytes(tm, tn, hidden, rank, x_dtype, w_dtype, out_dtype,
                       xa_dtype, a_buffers):
    return (
        2 * _tile_vmem_bytes(tm, hidden, x_dtype)             # x tile (2 bufs)
        + a_buffers * _tile_vmem_bytes(hidden, rank, w_dtype)  # A (lane-padded)
        + 2 * _tile_vmem_bytes(rank, tn, w_dtype)             # B tile (2 bufs)
        + 2 * _tile_vmem_bytes(tm, tn, out_dtype)             # out tile (2 bufs)
        + _tile_vmem_bytes(tm, rank, xa_dtype)                # xa scratch
    )


def _pick_tiles(M, hidden, rank, x_dtype, w_dtype, out_dtype, xa_dtype,
                budget, a_buffers):
    # Output-column tile candidates: full hidden first (nj == 1), then
    # descending 128-multiples.
    tn_cands = [hidden]
    if hidden % 128 == 0:
        for c in (4096, 2048, 1024, 512, 256, 128):
            if c < hidden:
                tn_cands.append(c)
    # Row-tile candidates: cap so ni = cdiv(M, tm) >= 2 and both v7x
    # TensorCores get work (harmless on single-TC v5e/v6e).
    tm_cap = max(8, _round_up(pl.cdiv(M, 2), 8))
    tm_cands = [c for c in (1024, 512, 256, 128, 64, 32, 16, 8) if c <= tm_cap]
    if not tm_cands:
        tm_cands = [8]

    def score(tm, tn):
        # Get tm up to the ~roofline-efficient 256 first, then prefer
        # fewer/larger column tiles, then the largest tm.
        return (min(tm, 256), tn, tm)

    best = None
    for tn in tn_cands:
        for tm in tm_cands:
            need = _working_set_bytes(tm, tn, hidden, rank, x_dtype, w_dtype,
                                      out_dtype, xa_dtype, a_buffers)
            if need <= budget:
                if best is None or score(tm, tn) > score(*best):
                    best = (tm, tn)
                break  # largest fitting tm for this tn found
    if best is None:
        best = (8, tn_cands[-1])  # nothing fits the budget; let compiler cope
    return best


def lora_forward(x, A, B, mxu_dtype=None):
    """LoRA forward: y = x @ A @ B with fp32 MXU accumulation.

    x: (..., hidden_dim); A: (hidden_dim, rank); B: (rank, hidden_dim).
    mxu_dtype: optional dtype (e.g. jnp.bfloat16) for the MXU operands; the
      cast happens INSIDE the kernel (no extra HBM passes), accumulation stays
      fp32 and the output is written directly in x.dtype.
    """
    hidden_dim, rank = A.shape
    assert B.shape == (rank, hidden_dim)
    assert x.shape[-1] == hidden_dim

    orig_shape = x.shape
    out_dtype = x.dtype
    x2d = x.reshape(-1, hidden_dim)
    M = x2d.shape[0]

    mxu_dtype = None if mxu_dtype is None else jnp.dtype(mxu_dtype)
    xa_dtype = mxu_dtype if mxu_dtype is not None else x2d.dtype

    budget, vmem_limit = _vmem_budget()

    # A is constant across the whole grid -> single-buffer it if this Pallas
    # version supports pipeline_mode (saves a lane-padded hidden x 128 buffer).
    a_index_map = lambda i, j: (0, 0)
    try:
        a_spec = pl.BlockSpec((hidden_dim, rank), a_index_map,
                              pipeline_mode=pl.Buffered(1))
        a_buffers = 1
    except Exception:
        a_spec = pl.BlockSpec((hidden_dim, rank), a_index_map)
        a_buffers = 2

    tm, tn = _pick_tiles(M, hidden_dim, rank, x2d.dtype, A.dtype, out_dtype,
                         xa_dtype, budget, a_buffers)

    ni = pl.cdiv(M, tm)          # partial last row block is masked by Pallas
    nj = pl.cdiv(hidden_dim, tn)

    cost = pl.CostEstimate(
        flops=4 * M * hidden_dim * rank,
        transcendentals=0,
        bytes_accessed=(
            x2d.size * x2d.dtype.itemsize                       # read x
            + M * hidden_dim * jnp.dtype(out_dtype).itemsize    # write y
            + A.size * A.dtype.itemsize
            + B.size * B.dtype.itemsize
        ),
    )

    out = pl.pallas_call(
        _make_lora_kernel(mxu_dtype),
        out_shape=jax.ShapeDtypeStruct((M, hidden_dim), out_dtype),
        grid_spec=pltpu.PrefetchScalarGridSpec(
            num_scalar_prefetch=0,
            grid=(ni, nj),
            in_specs=[
                # x: block index changes only with i -> DMA'd once per row
                # tile, resident across all column tiles j.
                pl.BlockSpec((tm, hidden_dim), lambda i, j: (i, 0)),
                # A: fully resident (constant index_map).
                a_spec,
                # B: one (rank, tn) column tile per j.
                pl.BlockSpec((rank, tn), lambda i, j: (0, j)),
            ],
            out_specs=pl.BlockSpec((tm, tn), lambda i, j: (i, j)),
            scratch_shapes=[pltpu.VMEM((tm, rank), xa_dtype)],
        ),
        compiler_params=pltpu.CompilerParams(
            # i: independent row tiles -> megacore-shard (v7x's two TCs).
            # j: MUST stay sequential so the xa scratch written at j == 0 is
            #    valid for the later column tiles of the same row tile.
            dimension_semantics=("parallel", "arbitrary"),
            vmem_limit_bytes=vmem_limit,
        ),
        cost_estimate=cost,
    )(x2d, A, B)

    return out.reshape(orig_shape)


def init_lora_params(key, hidden_dim, rank, dtype=jnp.float32):
    # Matches LoRALayer.reset_parameters():
    #   A <- zeros(hidden_dim, rank)
    #   B <- xavier_normal_(rank, hidden_dim), std = sqrt(2 / (fan_in + fan_out))
    A = jnp.zeros((hidden_dim, rank), dtype=dtype)
    std = (2.0 / (rank + hidden_dim)) ** 0.5
    B = std * jax.random.normal(key, (rank, hidden_dim), dtype=dtype)
    return A, B


if __name__ == "__main__":
    batch, seq, hidden_dim, rank = 2, 8, 32, 4

    key = jax.random.PRNGKey(0)
    kx, ka, kb, kr = jax.random.split(key, 4)

    x = jax.random.normal(kx, (batch, seq, hidden_dim), dtype=jnp.float32)

    # 1) Exact module init (A == 0 -> output all zeros, matches the spec).
    A0, B0 = init_lora_params(kb, hidden_dim, rank)
    y0 = jax.block_until_ready(lora_forward(x, A0, B0))
    assert y0.shape == (batch, seq, hidden_dim)
    assert y0.dtype == x.dtype
    assert jnp.allclose(y0, x @ A0 @ B0, atol=1e-5, rtol=1e-5)

    # 2) Non-vacuous check with a random (non-zero) A.
    A1 = 0.1 * jax.random.normal(ka, (hidden_dim, rank), dtype=jnp.float32)
    y1 = jax.block_until_ready(lora_forward(x, A1, B0))
    y1_ref = x @ A1 @ B0
    assert jnp.allclose(y1, y1_ref, atol=1e-4, rtol=1e-4)

    # 3) Ragged M (not a multiple of the row tile): exercises the cdiv grid /
    #    masked partial last row block (no wrapper pad/slice).
    x_r = jax.random.normal(kr, (3, 5, hidden_dim), dtype=jnp.float32)
    y_r = jax.block_until_ready(lora_forward(x_r, A1, B0))
    assert y_r.shape == (3, 5, hidden_dim)
    assert jnp.allclose(y_r, x_r @ A1 @ B0, atol=1e-4, rtol=1e-4)

    # 4) In-kernel bf16 MXU operands (no extra HBM traffic; fp32 accumulation,
    #    output stays in x.dtype).
    y1_bf16 = jax.block_until_ready(
        lora_forward(x, A1, B0, mxu_dtype=jnp.bfloat16)
    )
    assert y1_bf16.dtype == x.dtype
    assert jnp.allclose(y1_bf16, y1_ref, atol=5e-2, rtol=5e-2)

    print("KERNEL_OK")
</pallas_src>

<mosaic_0001>
module attributes {stable_mosaic.version = 11 : i64} {
  func.func @kernel(%arg0: i32, %arg1: i32, %arg2: memref<8x32xf32, #tpu.memory_space<vmem>>, %arg3: memref<32x4xf32, #tpu.memory_space<vmem>>, %arg4: memref<4x32xf32, #tpu.memory_space<vmem>>, %arg5: memref<8x32xf32, #tpu.memory_space<vmem>>, %arg6: memref<8x4xf32, #tpu.memory_space<vmem>>) attributes {dimension_semantics = [#tpu.dimension_semantics<parallel>, #tpu.dimension_semantics<arbitrary>], iteration_bounds = array<i64: 2, 1>, scalar_prefetch = 0 : i64, scratch_operands = 1 : i64, tpu.core_type = #tpu.core_type<tc>, window_params = [{transform_indices = @transform_0, window_bounds = array<i64: 8, 32>}, {pipeline_mode = #tpu.pipeline_mode<synchronous>, transform_indices = @transform_1, window_bounds = array<i64: 32, 4>}, {transform_indices = @transform_2, window_bounds = array<i64: 4, 32>}, {transform_indices = @transform_3, window_bounds = array<i64: 8, 32>}]} {
    %c0_i32 = arith.constant 0 : i32
    %0 = arith.cmpi eq, %arg1, %c0_i32 : i32
    %1 = arith.extui %0 : i1 to i32
    %c0_i32_0 = arith.constant 0 : i32
    %2 = arith.cmpi ne, %1, %c0_i32_0 : i32
    scf.if %2 {
      %c0_6 = arith.constant 0 : index
      %c0_7 = arith.constant 0 : index
      %7 = vector.load %arg2[%c0_6, %c0_7] : memref<8x32xf32, #tpu.memory_space<vmem>>, vector<8x32xf32>
      %c0_8 = arith.constant 0 : index
      %c0_9 = arith.constant 0 : index
      %8 = vector.load %arg3[%c0_8, %c0_9] : memref<32x4xf32, #tpu.memory_space<vmem>>, vector<32x4xf32>
      %cst_10 = arith.constant dense<0.000000e+00> : vector<8x4xf32>
      %9 = tpu.matmul %7, %8, %cst_10 {dimension_numbers = #tpu.dot_dimension_numbers<[1], [0], [0], [1], [0, 0, 1, 1], [], []>} : vector<8x32xf32>, vector<32x4xf32>, vector<8x4xf32> -> vector<8x4xf32>
      %c0_11 = arith.constant 0 : index
      %c0_12 = arith.constant 0 : index
      %10 = vector.load %arg6[%c0_11, %c0_12] : memref<8x4xf32, #tpu.memory_space<vmem>>, vector<8x4xf32>
      tpu.vector_store %arg6[%c0_11, %c0_12], %9 {strides = array<i32>} : memref<8x4xf32, #tpu.memory_space<vmem>>, vector<8x4xf32>,
    } else {
    }
    %c0 = arith.constant 0 : index
    %c0_1 = arith.constant 0 : index
    %3 = vector.load %arg4[%c0, %c0_1] : memref<4x32xf32, #tpu.memory_space<vmem>>, vector<4x32xf32>
    %c0_2 = arith.constant 0 : index
    %c0_3 = arith.constant 0 : index
    %4 = vector.load %arg6[%c0_2, %c0_3] : memref<8x4xf32, #tpu.memory_space<vmem>>, vector<8x4xf32>
    %cst = arith.constant dense<0.000000e+00> : vector<8x32xf32>
    %5 = tpu.matmul %4, %3, %cst {dimension_numbers = #tpu.dot_dimension_numbers<[1], [0], [0], [1], [0, 0, 1, 1], [], []>} : vector<8x4xf32>, vector<4x32xf32>, vector<8x32xf32> -> vector<8x32xf32>
    %c0_4 = arith.constant 0 : index
    %c0_5 = arith.constant 0 : index
    %6 = vector.load %arg5[%c0_4, %c0_5] : memref<8x32xf32, #tpu.memory_space<vmem>>, vector<8x32xf32>
    tpu.vector_store %arg5[%c0_4, %c0_5], %5 {strides = array<i32>} : memref<8x32xf32, #tpu.memory_space<vmem>>, vector<8x32xf32>,
    return
  }
  func.func @transform_0(%arg0: i32, %arg1: i32) -> (i32, i32) {
    %c0_i32 = arith.constant 0 : i32
    %c0_i32_0 = arith.constant 0 : i32
    return %arg0, %c0_i32 : i32, i32
  }
  func.func @transform_1(%arg0: i32, %arg1: i32) -> (i32, i32) {
    %c0_i32 = arith.constant 0 : i32
    %c0_i32_0 = arith.constant 0 : i32
    %c0_i32_1 = arith.constant 0 : i32
    return %c0_i32, %c0_i32_0 : i32, i32
  }
  func.func @transform_2(%arg0: i32, %arg1: i32) -> (i32, i32) {
    %c0_i32 = arith.constant 0 : i32
    %c0_i32_0 = arith.constant 0 : i32
    return %c0_i32, %arg1 : i32, i32
  }
  func.func @transform_3(%arg0: i32, %arg1: i32) -> (i32, i32) {
    %c0_i32 = arith.constant 0 : i32
    return %arg0, %arg1 : i32, i32
  }
}

</mosaic_0001>

<bundles_post_ra>
// kernel: tpu_custom_call.1
= control target key start
LH: loop header
LB: loop body
LE: loop exit
PB: predicated region body
PF: predicated region fallthrough
CT: control target
= control target key end

     0   :  { %8 = vsyncpa [#allocation4], 0  ;;  %s786_s0 = inlined_call_operand.vmem [shape: f32[16,32], index: 0, kind: input, shape index: {}]   ;;  %s787_s1 = inlined_call_operand.vmem [shape: f32[32,4], index: 1, kind: input, shape index: {}]   ;;  %s788_s2 = inlined_call_operand.vmem [shape: f32[4,32], index: 2, kind: input, shape index: {}]   ;;  %s789_s3 = inlined_call_operand.hbm [shape: f32[16,32], index: 3, kind: output, shape index: {}]  }
   0x1   :  { %10 = vsyncpa [#allocation4 + $0x1], 0  ;;  %s658_s12 = smov 0   ;;  %s660_s13 = smov 0  }
   0x2   :  { %s662_s14 = smov 0   ;;  %s664_s15 = smov 0  }
   0x3   :  { %s666_s16 = smov 0   ;;  %s668_s17 = smov 0  }
   0x4 LB: > { %s462_s18 = sadd.s32 4294967295, %s633_s17   ;;  %s463_s19 = sadd.s32 4294967294, %s633_s17   ;;  %s633_s17 = sphi %s668_s17, %s16_s17   ;;  %s629_s16 = sphi %s666_s16, %s796_s16   ;;  %s625_s15 = sphi %s664_s15, %s795_s15   ;;  %s621_s14 = sphi %s662_s14, %s794_s14   ;;  %s617_s13 = sphi %s660_s13, %s793_s13   ;;  %s613_s12 = sphi %s658_s12, %s792_s12  }
   0x5   : > { %s28_s20 = sadd.s32 1, %s629_s16  ;;  %s110_s21 = sadd.s32 1, %s621_s14 }
   0x6   : > { %p30_p0 = scmp.ge.s32.totalorder %s28_s20, 2  ;;  %p120_p1 = scmp.ne.s32.totalorder %s621_s14, %s617_s13 }
   0x7   : > { %p121_p2 = scmp.eq.s32.totalorder %s462_s18, 1  ;;  %p126_p3 = scmp.ne.s32.totalorder %s617_s13, %s613_s12 }
   0x8   : > { %s798_s20 = smov (%p30_p0, %s28_s20), 0  ;;  %p127_p5 = scmp.eq.s32.totalorder %s463_s19, 1 }
   0x9   : > { %p698_p4 = por %p121_p2, %p120_p1  ;;  %s105_s23 = ssub.s32 %s629_s16, %s798_s20 }
   0xa   : > { %p467_p6 = scmp.ge.s32.totalorder %s633_s17, 1  ;;  %p108_p7 = scmp.eq.s32.totalorder %s105_s23, 0 }
   0xb   : > { %p705_p8 = por %p127_p5, %p126_p3  ;;  %p162_p9 = scmp.lt.s32.totalorder %s633_s17, 3 }
   0xc   : > { %s711_s25 = scalar_select %p108_p7, %s621_s14, %s110_s21  }
   0xd   : > { %p163_p10 = pnand %p467_p6, %p162_p9 }
   0xe   : > { %p189_p11 = scmp.lt.s32.totalorder (!%p163_p10), %s625_s15, 1  ;;  %s186_s21 = sand.u32 (!%p163_p10), 1, %s617_s13  }
   0xf   : > { %166 = sbr.rel (%p163_p10) target bundleno = 437 (0x1b5), region = 32  ;;  %s468_s23 = sshll.u32 (!%p163_p10), %s186_s21, 3 }
  0x10   : > { %s474_s26 = sshll.u32 (!%p163_p10), %s625_s15, 7  ;;  %s188_s27 = scalar_lea.vmem (!%p163_p10), [#allocation3], %s468_s23 }
  0x11   : > { %s379_s28 = sshll.u32 (!%p163_p10), %s188_s27, 4  ;;  %s739_s4 = scalar_lea.hbm (!%p163_p10), %s789_s3, %s474_s26  ;;  %s741_s28 = int_to_ptr.vmem [resolvable:$true] %s379_s28 }
  0x12   : > { %s365_s5 = scalar_lea.sflag (!%p163_p10), [#allocation4], %s186_s21 }
  0x14   : > { %v205_v0 = vld [vmem:[%s787_s1 + $0x18] sm:$0xff]  ;;  %v635_v1 = vmov 0.0   ;;  %v204_v2 = vld [vmem:[%s787_s1 + $0x10] sm:$0xff]  ;;  %vm636_vm0 = vmmov 0   ;;  %s190_s30 = scalar_select %p189_p11, %s625_s15, 1  ;;  %v203_v3 = vld [vmem:[%s787_s1 + $0x8] sm:$0xff] }
  0x15   : > { %484 = vmatprep.subr.mxu0 %v635_v1  ;;  %492 = vmatprep.mubr.msk.f32.mxu0 %vm636_vm0, %v635_v1  ;;  %v202_v4 = vld [vmem:[%s787_s1] sm:$0xff]  ;;  %vm206_vm1 = vcmask 261120   ;;  %vm288_vm2 = vcmask 1043456   ;;  %vm280_vm3 = vcmask 31744   ;;  %s637_s15 = smov [#allocation3]  }
  0x16   : > { %485 = vmatpush3.msra.mxu0 %v205_v0  ;;  %495 = vmatprep.subr.mxu1 %v635_v1  ;;  %s469_s6 = sshll.u32 %s190_s30, 3  ;;  %v282_v6 = vld [vmem:[%s788_s2] sm:$0xf]  ;;  %s561_s7 = sshll.u32 %s637_s15, 4  ;;  %s562_s7 = int_to_ptr.vmem [resolvable:$false] %s561_s7 }
  0x17   : > { %486 = vmatprep.subr.mxu0 %v635_v1  ;;  %497 = vmatprep.mubr.msk.f32.mxu1 %vm636_vm0, %v635_v1  ;;  %s192_s11 = scalar_lea.vmem %s786_s0, %s469_s6  ;;  %s557_s6 = scalar_lea.vmem %s741_s28, 128 }
  0x18   : > { %487 = vmatpush3.msra.mxu0 %v204_v2  ;;  %v201_v5 = vld [vmem:[%s192_s11] sm:$0xff]  ;;  %496 = vmatpush3.msk.msra.mxu1 %vm288_vm2, %v282_v6  ;;  %p558_p12 = scmp.ne.s32.totalorder %s741_s28, %s557_s6  ;;  %s563_s8 = scalar_lea.vmem %s562_s7, 256 }
  0x19   : > { %488 = vmatprep.subr.mxu0 %v635_v1  ;;  %p564_p1 = scmp.lt.s32.totalorder %s741_s28, %s562_s7  ;;  %p565_p2 = scmp.lt.s32.totalorder %s563_s8, %s557_s6 }
  0x1a   : > { %489 = vmatpush3.msra.mxu0 %v203_v3  ;;  %p559_p13 = pnand %p558_p12, %p698_p4 }
  0x1b   : > { %490 = vmatprep.subr.mxu0 %v635_v1  ;;  %p566_p3 = por %p565_p2, %p564_p1 }
  0x1c   : > { %491 = vmatpush3.msra.mxu0 %v202_v4  ;;  %p560_p0 = pneg %p559_p13 }
  0x1d   : > { %493 = vmatmul.mubr.msk.f32.vlgmr.msra.gmra.mxu0 %vm206_vm1, %v201_v5 }
  0x1e   : > { %p567_p5 = pnand %p566_p3, %p560_p0 }
  0xdd   : > { %v276_v7 = vpop.f32.mrf.mxu0 }
  0xde   : > { %281 = vst.msk [vmem:[#allocation2] sm:$0xff] %vm280_vm3, %v276_v7 }
  0xdf   : > { %v494_v8 = vpop.f32.mrf.mxu0 }
  0xe5   : > { %v283_v9 = vld [vmem:[#allocation2] sm:$0xff] }
  0xe6   : > { %498 = vmatmul.mubr.msk.f32.vlgmr.msra.gmra.mxu1 %vm280_vm3, %v283_v9 }
 0x1a6   : > { %v358_v10 = vpop.f32.mrf.mxu1 }
 0x1a7   : > { %363 = vst.msk [vmem:[%s188_s27] sm:$0xff] %vm206_vm1, %v358_v10 }
 0x1a8   : > { %v499_v11 = vpop.f32.mrf.mxu1 }
 0x1a9   : > { %570 = shalt.err (!%p567_p5)
}
 0x1aa   : > { %s571_s9 = scalar_lea.hbm %s739_s4, 128  ;;  %s575_s18 = scalar_lea.hbm %s789_s3, 256 }
 0x1ab   : > { %p572_p6 = scmp.ne.s32.totalorder %s739_s4, %s571_s9  ;;  %p576_p10 = scmp.lt.s32.totalorder %s739_s4, %s789_s3 }
 0x1ac   : > { %p577_p11 = scmp.lt.s32.totalorder %s575_s18, %s571_s9 }
 0x1ad   : > { %p573_p7 = pnand %p572_p6, %p698_p4 }
 0x1ae   : > { %p578_p12 = por %p577_p11, %p576_p10 }
 0x1af   : > { %p574_p9 = pneg %p573_p7 }
 0x1b1   : > { %p579_p13 = pnand %p578_p12, %p574_p9 }
 0x1b3   : > { %582 = shalt.err (!%p579_p13)
}
 0x1b4   : > { %500 = dma.vmem_to_hbm [thread:$0]  (%p698_p4), %s741_s28, 128, %s739_s4, %s365_s5  }
 0x1b5 PF: > { %p506_p0 = scmp.ge.s32.totalorder %s633_s17, 2  ;;  %s391_s23 = sand.u32 1, %s613_s12  }
 0x1b6   : > { %s392_s26 = scalar_lea.sflag [#allocation4], %s391_s23 }
 0x1b7   : > { %p503_p1 = pnand %p506_p0, %p705_p8 }
 0x1b9   : > { %p504_p2 = pneg %p503_p1 }
 0x1bb   : > { %608 = dma.done.wait (%p504_p2), %s392_s26, 128  }
 0x1bc   : > { %610 = vsyncadd (%p504_p2), %s392_s26, 4294967168  ;;  %s16_s17 = sadd.s32 1, %s633_s17   ;;  %s792_s12 = smov %s617_s13 }
 0x1bd   : > { %p13_p3 = scmp.ge.s32.totalorder %s16_s17, 4   ;;  %s793_s13 = smov %s621_s14 }
 0x1be   : > { %s794_s14 = smov %s711_s25  ;;  %s795_s15 = smov %s629_s16 }
 0x1bf   : > { %s796_s16 = smov %s798_s20  ;;  %15 = sbr.rel (!%p13_p3) target bundleno = 4 (0x4), region = 74 }
 0x1c4   :  { %397 = vsyncpa [#allocation4], 1 }
 0x1c5   :  { %399 = vsyncpa [#allocation4 + $0x1], 1 }

</bundles_post_ra>
